<compile_context>
chip_gen: v5e
topology: v5e:2x2
jax: 0.10.0
libtpu: 0.0.40
codegen_flags: <defaults>
</compile_context>

<pallas_src>
import functools

import jax
import jax.numpy as jnp
from jax import lax
from jax.experimental import pallas as pl
from jax.experimental.pallas import tpu as pltpu


def _conv3x3_lrelu_kernel(x_ref, w_ref, o_ref, patch_ref, *,
                          cin, wp, pn, negative_slope):
    """Fused 3x3 conv (pad=1, stride=1, bias=False) + LeakyReLU for one sample.

    x_ref:     (1, Cin, Hp*Wp)   flattened zero-padded input (VMEM)
    w_ref:     (Cout, 9*Cin)     weights, K ordered as (tap, cin)
    o_ref:     (1, Cout, Pn)     Pn = H*Wp flat output positions (lane-dense)
    patch_ref: (9*Cin, Pn)       im2col scratch (VMEM)
    """
    xf = x_ref[0]                                   # (Cin, Hp*Wp)

    # Build the im2col matrix: row (tap*Cin + ci) holds the flat image shifted by
    # s = dy*Wp + dx.  These are static lane-shifts of the same row — no per-tap
    # (H, W)->(H*W) reshape/relayout.
    for dy in range(3):
        for dx in range(3):
            t = dy * 3 + dx
            s = dy * wp + dx
            patch_ref[t * cin:(t + 1) * cin, :] = xf[:, s:s + pn]

    # Single MXU matmul with the full 9*Cin contraction, f32 accumulation.
    acc = jnp.dot(w_ref[...], patch_ref[...],
                  preferred_element_type=jnp.float32)        # (Cout, Pn)

    y = jnp.where(acc >= 0, acc, negative_slope * acc)        # LeakyReLU
    o_ref[0] = y.astype(o_ref.dtype)


def pixel_shuffle_block(x_nchw, w_oihw, *, upscale=2, negative_slope=0.01):
    """PixelShuffleBlock forward.  x: (N, Cin, H, W) NCHW; w: (Cout, Cin, 3, 3) OIHW.

    Returns (N, Cin, upscale*H, upscale*W).  kernel_size is fixed to 3 (module default).
    """
    N, Cin, H, W = x_nchw.shape
    Cout = w_oihw.shape[0]
    assert w_oihw.shape == (Cout, Cin, 3, 3)
    assert Cout == upscale * upscale * Cin

    Wp = W + 2               # padded width (1 left + 1 right)
    Hp = H + 3               # 1 top + 2 bottom zero rows: the extra zero row keeps
                             # every tap slice [s, s+Pn) in-bounds on the flat axis.
    Lf = Hp * Wp             # flattened padded length per channel
    Pn = H * Wp              # flat output positions computed per sample (lane axis)
    K9 = 9 * Cin

    # One zero-pad pass over the (small) input, then a free row-major reshape.
    x_pad = jnp.pad(x_nchw, ((0, 0), (0, 0), (1, 2), (1, 1)))
    xf = x_pad.reshape(N, Cin, Lf)

    # (Cout, Cin, 3, 3) -> (Cout, 9*Cin) with K ordered as (dy*3+dx)*Cin + ci,
    # matching the kernel's im2col row ordering.
    w2 = jnp.transpose(w_oihw, (0, 2, 3, 1)).reshape(Cout, K9)

    kernel = functools.partial(_conv3x3_lrelu_kernel, cin=Cin, wp=Wp, pn=Pn,
                               negative_slope=negative_slope)

    flops = 2 * N * Cout * K9 * Pn
    bytes_accessed = 4 * (N * Cin * Lf + Cout * K9 + N * Cout * Pn)

    y_flat = pl.pallas_call(
        kernel,
        out_shape=jax.ShapeDtypeStruct((N, Cout, Pn), x_nchw.dtype),
        grid=(N,),
        in_specs=[
            pl.BlockSpec((1, Cin, Lf), lambda n: (n, 0, 0)),
            pl.BlockSpec((Cout, K9), lambda n: (0, 0)),
        ],
        out_specs=pl.BlockSpec((1, Cout, Pn), lambda n: (n, 0, 0)),
        scratch_shapes=[pltpu.VMEM((K9, Pn), jnp.float32)],
        compiler_params=pltpu.CompilerParams(
            dimension_semantics=("parallel",)),
        cost_estimate=pl.CostEstimate(flops=flops, transcendentals=0,
                                      bytes_accessed=bytes_accessed),
    )(xf, w2)

    # Valid conv outputs live at flat position p = h*Wp + w with w < W; the two
    # padding columns per row are discarded here (one XLA pass, fused with the
    # PixelShuffle permutation below).
    y_conv = y_flat.reshape(N, Cout, H, Wp)[:, :, :, :W]       # (N, r^2*Cin, H, W)

    # PixelShuffle: out[n, c, r*h + i, r*w + j] = y[n, c*r^2 + i*r + j, h, w].
    r = upscale
    y6 = y_conv.reshape(N, Cin, r, r, H, W)
    y6 = jnp.transpose(y6, (0, 1, 4, 2, 5, 3))                 # (N, Cin, H, r, W, r)
    return y6.reshape(N, Cin, H * r, W * r)


def _reference(x_nchw, w_oihw, *, upscale=2, negative_slope=0.01):
    """Pure-JAX reference (conv_general_dilated + pixel shuffle) for correctness."""
    dn = ("NCHW", "OIHW", "NCHW")
    y = lax.conv_general_dilated(x_nchw, w_oihw, (1, 1), ((1, 1), (1, 1)),
                                 dimension_numbers=dn)
    y = jnp.where(y >= 0, y, negative_slope * y)
    N, C4, H, W = y.shape
    r = upscale
    C = C4 // (r * r)
    y = y.reshape(N, C, r, r, H, W).transpose(0, 1, 4, 2, 5, 3)
    return y.reshape(N, C, H * r, W * r)


if __name__ == "__main__":
    # PixelShuffleBlock(in_channels=4, kernel_size=3, bias=False,
    #                   negative_slope=0.01, upscale=2)
    N, Cin, H, W = 2, 4, 16, 16
    upscale, negative_slope = 2, 0.01
    Cout = upscale * upscale * Cin

    key = jax.random.PRNGKey(0)
    kx, kw = jax.random.split(key)
    x = jax.random.normal(kx, (N, Cin, H, W), dtype=jnp.float32)
    # Conv weight in PyTorch OIHW layout, roughly kaiming-scaled (ICNR init is an
    # init-time detail only; forward math is identical).
    w = jax.random.normal(kw, (Cout, Cin, 3, 3), jnp.float32) / jnp.sqrt(9.0 * Cin)

    out = pixel_shuffle_block(x, w, upscale=upscale, negative_slope=negative_slope)
    out = jax.block_until_ready(out)

    ref = _reference(x, w, upscale=upscale, negative_slope=negative_slope)
    assert out.shape == (N, Cin, upscale * H, upscale * W), out.shape
    max_err = float(jnp.max(jnp.abs(out - ref)))
    assert jnp.allclose(out, ref, rtol=1e-3, atol=1e-3), max_err

    print("KERNEL_OK")
</pallas_src>

<mosaic_0001>
module attributes {stable_mosaic.version = 11 : i64} {
  func.func @_conv3x3_lrelu_kernel(%arg0: i32, %arg1: memref<1x4x342xf32, #tpu.memory_space<vmem>>, %arg2: memref<16x36xf32, #tpu.memory_space<vmem>>, %arg3: memref<1x16x288xf32, #tpu.memory_space<vmem>>, %arg4: memref<36x288xf32, #tpu.memory_space<vmem>>) attributes {dimension_semantics = [#tpu.dimension_semantics<parallel>], iteration_bounds = array<i64: 2>, scalar_prefetch = 0 : i64, scratch_operands = 1 : i64, tpu.core_type = #tpu.core_type<tc>, window_params = [{transform_indices = @transform_0, window_bounds = array<i64: 1, 4, 342>}, {pipeline_mode = #tpu.pipeline_mode<synchronous>, transform_indices = @transform_1, window_bounds = array<i64: 16, 36>}, {transform_indices = @transform_2, window_bounds = array<i64: 1, 16, 288>}]} {
    %c0 = arith.constant 0 : index
    %c0_0 = arith.constant 0 : index
    %c0_1 = arith.constant 0 : index
    %0 = vector.load %arg1[%c0, %c0_0, %c0_1] : memref<1x4x342xf32, #tpu.memory_space<vmem>>, vector<1x4x342xf32>
    %1 = vector.shape_cast %0 : vector<1x4x342xf32> to vector<4x342xf32>
    %2 = vector.extract_strided_slice %1 {offsets = [0, 0], sizes = [4, 288], strides = [1, 1]} : vector<4x342xf32> to vector<4x288xf32>
    %c0_2 = arith.constant 0 : index
    %c0_3 = arith.constant 0 : index
    %3 = vector.load %arg4[%c0_2, %c0_3] : memref<36x288xf32, #tpu.memory_space<vmem>>, vector<4x288xf32>
    tpu.vector_store %arg4[%c0_2, %c0_3], %2 {strides = array<i32>} : memref<36x288xf32, #tpu.memory_space<vmem>>, vector<4x288xf32>,
    %4 = vector.extract_strided_slice %1 {offsets = [0, 1], sizes = [4, 288], strides = [1, 1]} : vector<4x342xf32> to vector<4x288xf32>
    %c4 = arith.constant 4 : index
    %c0_4 = arith.constant 0 : index
    %5 = vector.load %arg4[%c4, %c0_4] : memref<36x288xf32, #tpu.memory_space<vmem>>, vector<4x288xf32>
    tpu.vector_store %arg4[%c4, %c0_4], %4 {strides = array<i32>} : memref<36x288xf32, #tpu.memory_space<vmem>>, vector<4x288xf32>,
    %6 = vector.extract_strided_slice %1 {offsets = [0, 2], sizes = [4, 288], strides = [1, 1]} : vector<4x342xf32> to vector<4x288xf32>
    %c8 = arith.constant 8 : index
    %c0_5 = arith.constant 0 : index
    %7 = vector.load %arg4[%c8, %c0_5] : memref<36x288xf32, #tpu.memory_space<vmem>>, vector<4x288xf32>
    tpu.vector_store %arg4[%c8, %c0_5], %6 {strides = array<i32>} : memref<36x288xf32, #tpu.memory_space<vmem>>, vector<4x288xf32>,
    %8 = vector.extract_strided_slice %1 {offsets = [0, 18], sizes = [4, 288], strides = [1, 1]} : vector<4x342xf32> to vector<4x288xf32>
    %c12 = arith.constant 12 : index
    %c0_6 = arith.constant 0 : index
    %9 = vector.load %arg4[%c12, %c0_6] : memref<36x288xf32, #tpu.memory_space<vmem>>, vector<4x288xf32>
    tpu.vector_store %arg4[%c12, %c0_6], %8 {strides = array<i32>} : memref<36x288xf32, #tpu.memory_space<vmem>>, vector<4x288xf32>,
    %10 = vector.extract_strided_slice %1 {offsets = [0, 19], sizes = [4, 288], strides = [1, 1]} : vector<4x342xf32> to vector<4x288xf32>
    %c16 = arith.constant 16 : index
    %c0_7 = arith.constant 0 : index
    %11 = vector.load %arg4[%c16, %c0_7] : memref<36x288xf32, #tpu.memory_space<vmem>>, vector<4x288xf32>
    tpu.vector_store %arg4[%c16, %c0_7], %10 {strides = array<i32>} : memref<36x288xf32, #tpu.memory_space<vmem>>, vector<4x288xf32>,
    %12 = vector.extract_strided_slice %1 {offsets = [0, 20], sizes = [4, 288], strides = [1, 1]} : vector<4x342xf32> to vector<4x288xf32>
    %c20 = arith.constant 20 : index
    %c0_8 = arith.constant 0 : index
    %13 = vector.load %arg4[%c20, %c0_8] : memref<36x288xf32, #tpu.memory_space<vmem>>, vector<4x288xf32>
    tpu.vector_store %arg4[%c20, %c0_8], %12 {strides = array<i32>} : memref<36x288xf32, #tpu.memory_space<vmem>>, vector<4x288xf32>,
    %14 = vector.extract_strided_slice %1 {offsets = [0, 36], sizes = [4, 288], strides = [1, 1]} : vector<4x342xf32> to vector<4x288xf32>
    %c24 = arith.constant 24 : index
    %c0_9 = arith.constant 0 : index
    %15 = vector.load %arg4[%c24, %c0_9] : memref<36x288xf32, #tpu.memory_space<vmem>>, vector<4x288xf32>
    tpu.vector_store %arg4[%c24, %c0_9], %14 {strides = array<i32>} : memref<36x288xf32, #tpu.memory_space<vmem>>, vector<4x288xf32>,
    %16 = vector.extract_strided_slice %1 {offsets = [0, 37], sizes = [4, 288], strides = [1, 1]} : vector<4x342xf32> to vector<4x288xf32>
    %c28 = arith.constant 28 : index
    %c0_10 = arith.constant 0 : index
    %17 = vector.load %arg4[%c28, %c0_10] : memref<36x288xf32, #tpu.memory_space<vmem>>, vector<4x288xf32>
    tpu.vector_store %arg4[%c28, %c0_10], %16 {strides = array<i32>} : memref<36x288xf32, #tpu.memory_space<vmem>>, vector<4x288xf32>,
    %18 = vector.extract_strided_slice %1 {offsets = [0, 38], sizes = [4, 288], strides = [1, 1]} : vector<4x342xf32> to vector<4x288xf32>
    %c32 = arith.constant 32 : index
    %c0_11 = arith.constant 0 : index
    %19 = vector.load %arg4[%c32, %c0_11] : memref<36x288xf32, #tpu.memory_space<vmem>>, vector<4x288xf32>
    tpu.vector_store %arg4[%c32, %c0_11], %18 {strides = array<i32>} : memref<36x288xf32, #tpu.memory_space<vmem>>, vector<4x288xf32>,
    %c0_12 = arith.constant 0 : index
    %c0_13 = arith.constant 0 : index
    %20 = vector.load %arg2[%c0_12, %c0_13] : memref<16x36xf32, #tpu.memory_space<vmem>>, vector<16x36xf32>
    %c0_14 = arith.constant 0 : index
    %c0_15 = arith.constant 0 : index
    %21 = vector.load %arg4[%c0_14, %c0_15] : memref<36x288xf32, #tpu.memory_space<vmem>>, vector<36x288xf32>
    %cst = arith.constant dense<0.000000e+00> : vector<16x288xf32>
    %22 = tpu.matmul %20, %21, %cst {dimension_numbers = #tpu.dot_dimension_numbers<[1], [0], [0], [1], [0, 0, 1, 1], [], []>} : vector<16x36xf32>, vector<36x288xf32>, vector<16x288xf32> -> vector<16x288xf32>
    %cst_16 = arith.constant 0.000000e+00 : f32
    %23 = vector.broadcast %cst_16 : f32 to vector<16x288xf32>
    %24 = arith.cmpf oge, %22, %23 : vector<16x288xf32>
    %cst_17 = arith.constant 0.00999999977 : f32
    %25 = vector.broadcast %cst_17 : f32 to vector<16x288xf32>
    %26 = arith.mulf %25, %22 : vector<16x288xf32>
    %27 = arith.select %24, %22, %26 : vector<16x288xi1>, vector<16x288xf32>
    %c0_18 = arith.constant 0 : index
    %c0_19 = arith.constant 0 : index
    %c0_20 = arith.constant 0 : index
    %28 = vector.load %arg3[%c0_18, %c0_19, %c0_20] : memref<1x16x288xf32, #tpu.memory_space<vmem>>, vector<1x16x288xf32>
    %29 = vector.shape_cast %28 : vector<1x16x288xf32> to vector<16x288xf32>
    %30 = vector.shape_cast %27 : vector<16x288xf32> to vector<1x16x288xf32>
    tpu.vector_store %arg3[%c0_18, %c0_19, %c0_20], %30 {strides = array<i32>} : memref<1x16x288xf32, #tpu.memory_space<vmem>>, vector<1x16x288xf32>,
    return
  }
  func.func @transform_0(%arg0: i32) -> (i32, i32, i32) {
    %c0_i32 = arith.constant 0 : i32
    %c0_i32_0 = arith.constant 0 : i32
    %c0_i32_1 = arith.constant 0 : i32
    return %arg0, %c0_i32, %c0_i32_0 : i32, i32, i32
  }
  func.func @transform_1(%arg0: i32) -> (i32, i32) {
    %c0_i32 = arith.constant 0 : i32
    %c0_i32_0 = arith.constant 0 : i32
    %c0_i32_1 = arith.constant 0 : i32
    return %c0_i32, %c0_i32_0 : i32, i32
  }
  func.func @transform_2(%arg0: i32) -> (i32, i32, i32) {
    %c0_i32 = arith.constant 0 : i32
    %c0_i32_0 = arith.constant 0 : i32
    %c0_i32_1 = arith.constant 0 : i32
    return %arg0, %c0_i32, %c0_i32_0 : i32, i32, i32
  }
}

</mosaic_0001>

<bundles_post_ra>
// kernel: tpu_custom_call.1
= control target key start
LH: loop header
LB: loop body
LE: loop exit
PB: predicated region body
PF: predicated region fallthrough
CT: control target
= control target key end

     0   :  { %7 = vsyncpa [#allocation4], 0  ;;  %s1051_s0 = inlined_call_operand.hbm [shape: f32[2,4,342], index: 0, kind: input, shape index: {}]   ;;  %s1052_s1 = inlined_call_operand.hbm [shape: f32[16,36], index: 1, kind: input, shape index: {}]   ;;  %s1053_s2 = inlined_call_operand.hbm [shape: f32[2,16,288], index: 2, kind: output, shape index: {}]  }
   0x1   :  { %9 = vsyncpa [#allocation4 + $0x1], 0 }
   0x2   :  { %10 = vsyncpa [#allocation7], 0 }
   0x3   :  { %11 = vsyncpa [#allocation5], 0 }
   0x4   :  { %13 = vsyncpa [#allocation5 + $0x1], 0  ;;  %s854_s9 = smov 0   ;;  %s856_s10 = smov 0  }
   0x5   :  { %s858_s11 = smov 0   ;;  %s860_s12 = smov 0  }
   0x6 LB: > { %s108_s15 = sshll.u32 %s1052_s1, 4  ;;  %s878_s16 = sadd.s32 4294967295, %s824_s12   ;;  %s824_s12 = sphi %s860_s12, %s1063_s12   ;;  %s820_s11 = sphi %s858_s11, %s1062_s11   ;;  %s816_s10 = sphi %s856_s10, %s1061_s10   ;;  %s812_s9 = sphi %s854_s9, %s1060_s9   ;;  %s109_s15 = int_to_ptr.hbm [resolvable:$true] %s108_s15 }
   0x7   : > { %p597_p0 = scmp.ge.s32.totalorder %s824_s12, 1  ;;  %p40_p1 = scmp.eq.s32.totalorder %s878_s16, 0 }
   0x8   : > { %p97_p2 = scmp.lt.s32.totalorder %s824_s12, 3  ;;  %s826_s18 = smov [#allocation6]  }
   0x9   : > { %s110_s19 = sshll.u32 %s826_s18, 4  ;;  %s827_s20 = smov 128   ;;  %s111_s19 = int_to_ptr.vmem [resolvable:$true] %s110_s19 }
   0xa   : > { %p883_p3 = pnand %p597_p0, %p97_p2  ;;  %s828_s21 = smov 8  }
   0xb   : > { %s596_s22 = sadd.s32 4294967294, %s824_s12   ;;  %s894_s23 = sadd.s32 1, %s824_s12  }
   0xc   : > { %p633_p4 = pneg %p883_p3  ;;  %s26_s24 = sadd.s32 1, %s820_s11 }
   0xd   : > { %s23_s25 = ssub.s32 %s824_s12, %s894_s23  ;;  %p33_p7 = scmp.ne.s32.totalorder %s820_s11, %s816_s10 }
   0xe   : > { %p634_p6 = pnand %p633_p4, %p40_p1  ;;  %p24_p8 = scmp.eq.s32.totalorder %s23_s25, 0 }
   0xf   : > { %p34_p9 = scmp.eq.s32.totalorder %s824_s12, 0  ;;  %p39_p10 = scmp.ne.s32.totalorder %s816_s10, %s812_s9 }
  0x10   : > { %636 = dma.hbm_to_vmem [thread:$0]  (!%p634_p6), %s109_s15, 256, %s111_s19, [#allocation7], %s827_s20, %s827_s20, %s828_s21  }
  0x11   : > { %p84_p11 = scmp.eq.s32.totalorder %s878_s16, 1  ;;  %p35_p12 = por %p34_p9, %p33_p7 }
  0x12   : > { %s906_s26 = scalar_select %p24_p8, %s820_s11, %s26_s24  }
  0x13   : > { %p910_p13 = por %p40_p1, %p39_p10  ;;  %p914_p0 = por %p84_p11, %p33_p7 }
  0x14   : > { %p90_p2 = scmp.eq.s32.totalorder %s596_s22, 1  ;;  %p646_p4 = scmp.lt.s32.totalorder %s824_s12, 2 }
  0x15   : > { %s124_s29 = sand.u32 1, %s820_s11   ;;  %s621_s5 = smul.u32 12, %s824_s12 }
  0x16   : > { %p920_p6 = por %p90_p2, %p39_p10  ;;  %s620_s3 = smul.u32 12, %s124_s29 }
  0x17   : > { %p924_p8 = pnand %p646_p4, %p35_p12  ;;  %s133_s8 = scalar_lea.hbm %s1051_s0, %s621_s5 }
  0x18   : > { %s128_s13 = scalar_lea.vmem [#allocation3], %s620_s3  ;;  %s135_s15 = sshll.u32 %s133_s8, 4  ;;  %s136_s15 = int_to_ptr.hbm [resolvable:$true] %s135_s15 }
  0x19   : > { %s137_s14 = sshll.u32 %s128_s13, 4  ;;  %s125_s18 = scalar_lea.sflag [#allocation4], %s124_s29  ;;  %s138_s14 = int_to_ptr.vmem [resolvable:$true] %s137_s14 }
  0x1a   : > { %s724_s19 = sshra.s32 %s136_s15, 4  ;;  %p728_p9 = pneg %p924_p8  ;;  %s725_s19 = int_to_ptr.hbm [resolvable:$true] %s724_s19 }
  0x1b   : > { %s726_s20 = scalar_lea.hbm %s725_s19, 12  ;;  %s731_s24 = scalar_lea.hbm %s1051_s0, 24 }
  0x1c   : > { %p727_p7 = scmp.ne.s32.totalorder %s725_s19, %s726_s20  ;;  %p732_p12 = scmp.lt.s32.totalorder %s725_s19, %s1051_s0 }
  0x1d   : > { %p733_p2 = scmp.lt.s32.totalorder %s731_s24, %s726_s20 }
  0x1e   : > { %p729_p10 = pnand %p728_p9, %p727_p7 }
  0x1f   : > { %p734_p4 = por %p733_p2, %p732_p12 }
  0x20   : > { %p730_p11 = pneg %p729_p10 }
  0x22   : > { %p735_p5 = pnand %p734_p4, %p730_p11 }
  0x24   : > { %738 = shalt.err (!%p735_p5)
}
  0x25   : > { %640 = dma.hbm_to_vmem [thread:$0]  (!%p924_p8), %s136_s15, 192, %s138_s14, %s125_s18  }
  0x26   : > { %146 = sbr.rel (%p883_p3) target bundleno = 414 (0x19e), region = 28  ;;  %s945_s29 = sand.u32 (!%p883_p3), 1, %s816_s10  }
  0x27   : > { %s622_s3 = smul.u32 (!%p883_p3), 12, %s945_s29  ;;  %s149_s6 = scalar_lea.sflag (!%p883_p3), [#allocation4], %s945_s29 }
  0x29   : > { %s152_s7 = scalar_lea.vmem (!%p883_p3), [#allocation3], %s622_s3 }
  0x2b   : > { %799 = dma.done.wait (%p910_p13), %s149_s6, 192  }
  0x2c   : > { %801 = vsyncadd (%p910_p13), %s149_s6, 4294967104 }
  0x2d   : > { %803 = dma.done.wait (%p40_p1), [#allocation7], 256  }
  0x2e   : > { %805 = vsyncadd (%p40_p1), [#allocation7], 4294967040  ;;  %v179_v0 = vld [vmem:[%s152_s7] sm:$0xff]  ;;  %v180_v1 = vld [vmem:[%s152_s7 + $0x8] sm:$0xf]  ;;  %s829_s17 = smov 127  }
  0x2f   : > { %183 = vst [vmem:[#allocation1] ss:$2 sm:$0xff] %v179_v0  ;;  %s830_s27 = smov 126   ;;  %s831_s4 = smov 110   ;;  %vm217_vm0 = vcmask 261124   ;;  %vm194_vm1 = vcmask 257024  }
  0x30   : > { %185 = vst [vmem:[#allocation1 + $0x10] ss:$2 sm:$0xff] %v180_v1  ;;  %s832_s8 = smov 109   ;;  %s833_s13 = smov 108   ;;  %vm231_vm2 = vcmask 1031168   ;;  %vm253_vm3 = vcmask 900096  }
  0x31   : > { %s834_s14 = smov 92   ;;  %s835_s15 = smov 91   ;;  %vm274_vm4 = vcmask 891904   ;;  %vm317_vm5 = vcmask 752640   ;;  %vm296_vm6 = vcmask 883712   ;;  %vm209_vm7 = vcmask 1039360  }
  0x32   : > { %s836_s18 = smov 90   ;;  %vm339_vm8 = vcmask 744448   ;;  %vm360_vm9 = vcmask 736256   ;;  %vm393_vm10 = vcmask 1043456   ;;  %vm386_vm11 = vcmask 293888   ;;  %s623_s19 = smul.u32 48, %s945_s29 }
  0x33   : > { %vm492_vm14 = vcmask 261120   ;;  %s624_s21 = smul.u32 48, %s878_s16  ;;  %s498_s3 = scalar_lea.sflag [#allocation5], %s945_s29 }
  0x34   : > { %s1007_s20 = scalar_lea.vmem [#allocation8], %s623_s19 }
  0x35   : > { %s509_s25 = scalar_lea.hbm %s1053_s2, %s624_s21  ;;  %s510_s5 = sshll.u32 %s1007_s20, 4  ;;  %s511_s5 = int_to_ptr.vmem [resolvable:$true] %s510_s5 }
  0x36   : > { %v186_v2 = vld.sshfl [vmem:[#allocation1] sm:$0xff pattern:$0x75316420]  ;;  %v187_v3 = vld.sshfl [vmem:[#allocation1 + $0x8] sm:$0xff pattern:$0x75316420] }
  0x37   : > { %197 = vst [vmem:[#allocation1 + $0x1] ss:$2 sm:$0xff] %v179_v0  ;;  %v957_v4 = vld.sshfl [vmem:[#allocation1 + $0x10] sm:$0xff pattern:$0x75316420]  ;;  %s512_s16 = sshll.u32 %s509_s25, 4  ;;  %s513_s16 = int_to_ptr.hbm [resolvable:$true] %s512_s16 }
  0x38   : > { %192 = vst [vmem:[#allocation2] sm:$0xf] %v186_v2  ;;  %s768_s6 = sshra.s32 %s513_s16, 4  ;;  %s769_s6 = int_to_ptr.hbm [resolvable:$true] %s768_s6 }
  0x39   : > { %193 = vst [vmem:[#allocation2 + $0x8] sm:$0xf] %v187_v3  ;;  %s770_s7 = scalar_lea.hbm %s769_s6, 48  ;;  %p775_p13 = scmp.lt.s32.totalorder %s769_s6, %s1053_s2 }
  0x3a   : > { %199 = vst [vmem:[#allocation1 + $0x11] ss:$2 sm:$0xff] %v180_v1  ;;  %p771_p1 = scmp.ne.s32.totalorder %s769_s6, %s770_s7 }
  0x3b   : > { %195 = vst.msk [vmem:[#allocation2 + $0x10] sm:$0xf] %vm194_vm1, %v957_v4 }
  0x3c   : > { %p772_p3 = pnand %p771_p1, %p914_p0 }
  0x3e   : > { %v959_v5 = vld.sshfl [vmem:[#allocation1] sm:$0xff pattern:$0x75316420]  ;;  %v201_v6 = vld.sshfl [vmem:[#allocation1 + $0x8] sm:$0xff pattern:$0x75316420]  ;;  %p773_p5 = pneg %p772_p3 }
  0x3f   : > { %219 = vst [vmem:[#allocation1] ss:$2 sm:$0xff] %v179_v0 }
  0x41   : > { %v202_v7 = vld.sshfl [vmem:[#allocation1 + $0x10] sm:$0xff pattern:$0x75316420] }
  0x42   : > { %207 = vrot.lane.b32.xlu2 %v202_v7, %s829_s17  ;;  %221 = vst [vmem:[#allocation1 + $0x10] ss:$2 sm:$0xff] %v180_v1 }
  0x46   : > { %v223_v8 = vld.sshfl [vmem:[#allocation1 + $0x8] sm:$0xff pattern:$0x75316420]  ;;  %v222_v9 = vld.sshfl [vmem:[#allocation1] sm:$0xff pattern:$0x75316420] }
  0x47   : > { %227 = vrot.lane.b32.xlu1 %v223_v8, %s830_s27  ;;  %241 = vst [vmem:[#allocation1 + $0x1] ss:$2 sm:$0xff] %v179_v0 }
  0x49   : > { %v224_v10 = vld.sshfl [vmem:[#allocation1 + $0x10] sm:$0xff pattern:$0x75316420] }
  0x4a   : > { %243 = vst [vmem:[#allocation1 + $0x11] ss:$2 sm:$0xff] %v180_v1  ;;  %229 = vrot.lane.b32.xlu0 %v224_v10, %s830_s27 }
  0x4e   : > { %v244_v11 = vld.sshfl [vmem:[#allocation1] sm:$0xff pattern:$0x75316420]  ;;  %v245_v12 = vld.sshfl [vmem:[#allocation1 + $0x8] sm:$0xff pattern:$0x75316420] }
  0x4f   : > { %249 = vrot.lane.b32.xlu2 %v245_v12, %s831_s4  ;;  %262 = vst [vmem:[#allocation1] ss:$2 sm:$0xff] %v179_v0 }
  0x51   : > { %v246_v13 = vld.sshfl [vmem:[#allocation1 + $0x10] sm:$0xff pattern:$0x75316420] }
  0x52   : > { %264 = vst [vmem:[#allocation1 + $0x10] ss:$2 sm:$0xff] %v180_v1  ;;  %251 = vrot.lane.b32.xlu1 %v246_v13, %s831_s4 }
  0x56   : > { %v266_v14 = vld.sshfl [vmem:[#allocation1 + $0x8] sm:$0xff pattern:$0x75316420]  ;;  %v265_v15 = vld.sshfl [vmem:[#allocation1] sm:$0xff pattern:$0x75316420] }
  0x57   : > { %270 = vrot.lane.b32.xlu0 %v266_v14, %s832_s8  ;;  %284 = vst [vmem:[#allocation1 + $0x1] ss:$2 sm:$0xff] %v179_v0 }
  0x59   : > { %v267_v16 = vld.sshfl [vmem:[#allocation1 + $0x10] sm:$0xff pattern:$0x75316420] }
  0x5a   : > { %286 = vst [vmem:[#allocation1 + $0x11] ss:$2 sm:$0xff] %v180_v1  ;;  %272 = vrot.lane.b32.xlu1 %v267_v16, %s832_s8 }
  0x5e   : > { %v288_v17 = vld.sshfl [vmem:[#allocation1 + $0x8] sm:$0xff pattern:$0x75316420]  ;;  %v287_v18 = vld.sshfl [vmem:[#allocation1] sm:$0xff pattern:$0x75316420] }
  0x5f   : > { %305 = vst [vmem:[#allocation1] ss:$2 sm:$0xff] %v179_v0 }
  0x61   : > { %v289_v19 = vld.sshfl [vmem:[#allocation1 + $0x10] sm:$0xff pattern:$0x75316420] }
  0x62   : > { %307 = vst [vmem:[#allocation1 + $0x10] ss:$2 sm:$0xff] %v180_v1  ;;  %294 = vrot.lane.b32.xlu2 %v289_v19, %s833_s13  ;;  %292 = vrot.lane.b32.xlu1 %v288_v17, %s833_s13  ;;  %v369_v17 = vld [vmem:[#allocation6] sm:$0xff] }
  0x66   : > { %v309_v20 = vld.sshfl [vmem:[#allocation1 + $0x8] sm:$0xff pattern:$0x75316420]  ;;  %v308_v21 = vld.sshfl [vmem:[#allocation1] sm:$0xff pattern:$0x75316420] }
  0x67   : > { %327 = vst [vmem:[#allocation1 + $0x1] ss:$2 sm:$0xff] %v179_v0 }
  0x69   : > { %v310_v22 = vld.sshfl [vmem:[#allocation1 + $0x10] sm:$0xff pattern:$0x75316420] }
  0x6a   : > { %329 = vst [vmem:[#allocation1 + $0x11] ss:$2 sm:$0xff] %v180_v1  ;;  %315 = vrot.lane.b32.xlu0 %v310_v22, %s834_s14  ;;  %313 = vrot.lane.b32.xlu2 %v309_v20, %s834_s14  ;;  %v370_v20 = vld [vmem:[#allocation6 + $0x8] sm:$0xff] }
  0x6e   : > { %v331_v23 = vld.sshfl [vmem:[#allocation1 + $0x8] sm:$0xff pattern:$0x75316420]  ;;  %v330_v24 = vld.sshfl [vmem:[#allocation1] sm:$0xff pattern:$0x75316420] }
  0x6f   : > { %348 = vst [vmem:[#allocation1] ss:$2 sm:$0xff] %v179_v0 }
  0x71   : > { %v332_v25 = vld.sshfl [vmem:[#allocation1 + $0x10] sm:$0xff pattern:$0x75316420] }
  0x72   : > { %350 = vst [vmem:[#allocation1 + $0x10] ss:$2 sm:$0xff] %v180_v1  ;;  %337 = vrot.lane.b32.xlu1 %v332_v25, %s835_s15  ;;  %311 = vrot.lane.b32.xlu2 %v308_v21, %s834_s14 }
  0x73   : > { %335 = vrot.lane.b32.xlu0 %v331_v23, %s835_s15 }
  0x76   : > { %v352_v26 = vld.sshfl [vmem:[#allocation1 + $0x8] sm:$0xff pattern:$0x75316420]  ;;  %v351_v27 = vld.sshfl [vmem:[#allocation1] sm:$0xff pattern:$0x75316420] }
  0x79   : > { %v353_v28 = vld.sshfl [vmem:[#allocation1 + $0x10] sm:$0xff pattern:$0x75316420] }
  0x7a   : > { %290 = vrot.lane.b32.xlu1 %v287_v18, %s833_s13  ;;  %356 = vrot.lane.b32.xlu2 %v352_v26, %s836_s18 }
  0x7b   : > { %333 = vrot.lane.b32.xlu0 %v330_v24, %s835_s15 }
  0x82   : > { %205 = vrot.lane.b32.xlu2 %v201_v6, %s829_s17  ;;  %354 = vrot.lane.b32.xlu1 %v351_v27, %s836_s18 }
  0x83   : > { %358 = vrot.lane.b32.xlu0 %v353_v28, %s836_s18 }
  0x8a   : > { %247 = vrot.lane.b32.xlu1 %v244_v11, %s831_s4  ;;  %203 = vrot.lane.b32.xlu2 %v959_v5, %s829_s17  ;;  %s774_s4 = scalar_lea.hbm %s1053_s2, 96 }
  0x8b   : > { %268 = vrot.lane.b32.xlu0 %v265_v15, %s832_s8  ;;  %p776_p8 = scmp.lt.s32.totalorder %s774_s4, %s770_s7 }
  0x8d   : > { %p777_p7 = por %p776_p8, %p775_p13 }
  0x8f   : > { %p778_p9 = pnand %p777_p7, %p773_p5 }
  0x93   : > { %225 = vrot.lane.b32.xlu0 %v222_v9, %s830_s27 }
  0x9c   : > { %v208_v29 = vpop.permute.xlu2 %207 }
  0x9d   : > { %218 = vst.msk [vmem:[#allocation2 + $0x10] sm:$0xf0] %vm217_vm0, %v208_v29 }
  0xa4   : > { %v373_v15 = vld [vmem:[#allocation2 + $0x10] sm:$0xff] }
  0xa9   : > { %v977_v30 = vpop.permute.xlu2 %249 }
  0xb9   : > { %v979_v31 = vpop.permute.xlu1 %227 }
  0xbc   : > { %v295_v32 = vpop.permute.xlu2 %294  ;;  %v230_v33 = vpop.permute.xlu0 %229 }
  0xbd   : > { %304 = vst.msk [vmem:[#allocation2 + $0x40] sm:$0xf0] %vm217_vm0, %v295_v32  ;;  %v233_v34 = vsel %vm231_vm2, %v979_v31, %v230_v33 }
  0xbe   : > { %238 = vst [vmem:[#allocation2 + $0x20] sm:$0xf] %v233_v34 }
  0xbf   : > { %239 = vst.msk [vmem:[#allocation2 + $0x28] sm:$0xf] %vm194_vm1, %v230_v33 }
  0xc4   : > { %v252_v35 = vpop.permute.xlu1 %251  ;;  %v314_v36 = vpop.permute.xlu2 %313 }
  0xc5   : > { %v255_v37 = vsel %vm253_vm3, %v977_v30, %v252_v35  ;;  %261 = vst.msk [vmem:[#allocation2 + $0x28] sm:$0xf0] %vm217_vm0, %v252_v35 }
  0xc6   : > { %260 = vst [vmem:[#allocation2 + $0x20] sm:$0xf0] %v255_v37 }
  0xc9   : > { %v271_v38 = vpop.permute.xlu0 %270 }
  0xcc   : > { %v273_v39 = vpop.permute.xlu1 %272  ;;  %v312_v40 = vpop.permute.xlu2 %311  ;;  %v376_v11 = vld [vmem:[#allocation2 + $0x28] sm:$0xff] }
  0xcd   : > { %282 = vst.msk [vmem:[#allocation2 + $0x40] sm:$0xf] %vm194_vm1, %v273_v39  ;;  %v318_v41 = vsel %vm317_vm5, %v312_v40, %v314_v36  ;;  %v276_v42 = vsel %vm274_vm4, %v271_v38, %v273_v39  ;;  %v375_v12 = vld [vmem:[#allocation2 + $0x20] sm:$0xff] }
  0xce   : > { %323 = vst [vmem:[#allocation2 + $0x48] sm:$0xf] %v318_v41 }
  0xcf   : > { %281 = vst [vmem:[#allocation2 + $0x38] sm:$0xf] %v276_v42 }
  0xd4   : > { %v293_v43 = vpop.permute.xlu1 %292  ;;  %v357_v44 = vpop.permute.xlu2 %356  ;;  %v379_v9 = vld [vmem:[#allocation2 + $0x40] sm:$0xff] }
  0xd5   : > { %v298_v45 = vsel %vm296_vm6, %v293_v43, %v295_v32 }
  0xd6   : > { %303 = vst [vmem:[#allocation2 + $0x38] sm:$0xf0] %v298_v45 }
  0xdc   : > { %v316_v46 = vpop.permute.xlu0 %315  ;;  %v206_v47 = vpop.permute.xlu2 %205 }
  0xdd   : > { %v319_v48 = vsel %vm317_vm5, %v314_v36, %v316_v46  ;;  %325 = vst.msk [vmem:[#allocation2 + $0x58] sm:$0xf] %vm194_vm1, %v316_v46  ;;  %v211_v49 = vsel %vm209_vm7, %v206_v47, %v208_v29  ;;  %v378_v10 = vld [vmem:[#allocation2 + $0x38] sm:$0xff] }
  0xde   : > { %324 = vst [vmem:[#allocation2 + $0x50] sm:$0xf] %v319_v48 }
  0xdf   : > { %216 = vst [vmem:[#allocation2 + $0x8] sm:$0xf0] %v211_v49 }
  0xe4   : > { %v338_v50 = vpop.permute.xlu1 %337  ;;  %v204_v51 = vpop.permute.xlu2 %203 }
  0xe5   : > { %347 = vst.msk [vmem:[#allocation2 + $0x58] sm:$0xf0] %vm217_vm0, %v338_v50  ;;  %v336_v52 = vpop.permute.xlu0 %335  ;;  %v210_v53 = vsel %vm209_vm7, %v204_v51, %v206_v47 }
  0xe6   : > { %v341_v54 = vsel %vm339_vm8, %v336_v52, %v338_v50  ;;  %215 = vst [vmem:[#allocation2] sm:$0xf0] %v210_v53  ;;  %v372_v18 = vld [vmem:[#allocation2 + $0x8] sm:$0xff] }
  0xe7   : > { %346 = vst [vmem:[#allocation2 + $0x50] sm:$0xf0] %v341_v54 }
  0xec   : > { %v291_v55 = vpop.permute.xlu1 %290  ;;  %v382_v6 = vld [vmem:[#allocation2 + $0x58] sm:$0xff] }
  0xed   : > { %v297_v56 = vsel %vm296_vm6, %v291_v55, %v293_v43  ;;  %v334_v57 = vpop.permute.xlu0 %333  ;;  %v371_v21 = vld [vmem:[#allocation2] sm:$0xff] }
  0xee   : > { %302 = vst [vmem:[#allocation2 + $0x30] sm:$0xf0] %v297_v56  ;;  %v340_v58 = vsel %vm339_vm8, %v334_v57, %v336_v52  ;;  %v381_v7 = vld [vmem:[#allocation2 + $0x50] sm:$0xff] }
  0xef   : > { %345 = vst [vmem:[#allocation2 + $0x48] sm:$0xf0] %v340_v58 }
  0xf4   : > { %v355_v59 = vpop.permute.xlu1 %354 }
  0xf5   : > { %v359_v60 = vpop.permute.xlu0 %358  ;;  %v361_v61 = vsel %vm360_vm9, %v355_v59, %v357_v44 }
  0xf6   : > { %v362_v62 = vsel %vm360_vm9, %v357_v44, %v359_v60  ;;  %368 = vst.msk [vmem:[#allocation2 + $0x70] sm:$0xf] %vm194_vm1, %v359_v60  ;;  %v380_v8 = vld [vmem:[#allocation2 + $0x48] sm:$0xff] }
  0xf7   : > { %367 = vst [vmem:[#allocation2 + $0x68] sm:$0xf] %v362_v62 }
  0xf8   : > { %366 = vst [vmem:[#allocation2 + $0x60] sm:$0xf] %v361_v61 }
  0xfc   : > { %v248_v63 = vpop.permute.xlu1 %247 }
  0xfd   : > { %v269_v0 = vpop.permute.xlu0 %268  ;;  %v254_v1 = vsel %vm253_vm3, %v248_v63, %v977_v30  ;;  %v385_v2 = vld [vmem:[#allocation2 + $0x70] sm:$0xf] }
  0xfe   : > { %v275_v3 = vsel %vm274_vm4, %v269_v0, %v271_v38  ;;  %259 = vst [vmem:[#allocation2 + $0x18] sm:$0xf0] %v254_v1  ;;  %609 = vmatpush.msk.msra.mxu2 %vm393_vm10, %v385_v2  ;;  %v384_v4 = vld [vmem:[#allocation2 + $0x68] sm:$0xf] }
  0xff   : > { %280 = vst [vmem:[#allocation2 + $0x30] sm:$0xf] %v275_v3  ;;  %606 = vmatpush.msk.msra.mxu1 %vm393_vm10, %v384_v4  ;;  %v383_v5 = vld [vmem:[#allocation2 + $0x60] sm:$0xf] }
 0x100   : > { %603 = vmatpush.msk.msra.mxu0 %vm393_vm10, %v383_v5  ;;  %615 = vmatpush.msk.msra.mxu3 %vm393_vm10, %v383_v5 }
 0x101   : > { %461 = vmatpush.msra.mxu2 %v382_v6  ;;  %438 = vmatpush.msra.mxu1 %v381_v7 }
 0x102   : > { %415 = vmatpush.msra.mxu0 %v380_v8  ;;  %616 = vmatpush.msra.mxu3 %v380_v8 }
 0x103   : > { %462 = vmatpush.msra.mxu2 %v379_v9  ;;  %439 = vmatpush.msra.mxu1 %v378_v10 }
 0x105   : > { %463 = vmatpush.msra.mxu2 %v376_v11  ;;  %v226_v13 = vpop.permute.xlu0 %225  ;;  %440 = vmatpush.msra.mxu1 %v375_v12 }
 0x106   : > { %v232_v14 = vsel %vm231_vm2, %v226_v13, %v979_v31  ;;  %v377_v16 = vld [vmem:[#allocation2 + $0x30] sm:$0xff] }
 0x107   : > { %237 = vst [vmem:[#allocation2 + $0x18] sm:$0xf] %v232_v14  ;;  %464 = vmatpush.msra.mxu2 %v373_v15  ;;  %416 = vmatpush.msra.mxu0 %v377_v16 }
 0x108   : > { %617 = vmatpush.msra.mxu3 %v377_v16  ;;  %441 = vmatpush.msra.mxu1 %v372_v18 }
 0x109   : > { %610 = vmatmul.msk.f32.vlgmr.msra.gmra.mxu2 %vm386_vm11, %v369_v17  ;;  %607 = vmatmul.msk.f32.vlgmr.msra.gmra.mxu1 %vm386_vm11, %v369_v17 }
 0x10e   : > { %v374_v19 = vld [vmem:[#allocation2 + $0x18] sm:$0xff] }
 0x10f   : > { %417 = vmatpush.msra.mxu0 %v374_v19  ;;  %618 = vmatpush.msra.mxu3 %v374_v19 }
 0x111   : > { %611 = vmatmul.msk.f32.gmra.mxu2 %vm386_vm11, %v370_v20  ;;  %418 = vmatpush.msra.mxu0 %v371_v21 }
 0x112   : > { %619 = vmatpush.msra.mxu3 %v371_v21  ;;  %604 = vmatmul.msk.f32.vlgmr.msra.gmra.mxu0 %vm386_vm11, %v369_v17 }
 0x113   : > { %605 = vmatmul.msk.f32.vlgmr.msra.gmra.mxu3 %vm386_vm11, %v370_v20  ;;  %608 = vmatmul.msk.f32.gmra.mxu1 %vm386_vm11, %v370_v20 }
 0x186   : > { %v443_v22 = vpop.f32.mrf.mxu1 }
 0x187   : > { %vm473_vm12 = vcmp.ge.f32.partialorder %v443_v22, 0.0  ;;  %v479_v23 = vmul.f32 0.01, %v443_v22 }
 0x189   : > { %v485_v24 = vsel %vm473_vm12, %v443_v22, %v479_v23 }
 0x18a   : > { %491 = vst [vmem:[%s1007_s20 + $0x8] sm:$0xff] %v485_v24 }
 0x18c   : > { %v466_v25 = vpop.f32.mrf.mxu2 }
 0x18d   : > { %vm474_vm13 = vcmp.ge.f32.partialorder %v466_v25, 0.0  ;;  %v480_v26 = vmul.f32 0.01, %v466_v25 }
 0x18f   : > { %v486_v27 = vsel %vm474_vm13, %v466_v25, %v480_v26  ;;  %v420_v28 = vpop.f32.mrf.mxu0 }
 0x190   : > { %493 = vst.msk [vmem:[%s1007_s20 + $0x10] sm:$0xff] %vm492_vm14, %v486_v27  ;;  %vm472_vm15 = vcmp.ge.f32.partialorder %v420_v28, 0.0  ;;  %v478_v29 = vmul.f32 0.01, %v420_v28  ;;  %v446_v30 = vpop.f32.mrf.mxu1 }
 0x191   : > { %vm476_vm0 = vcmp.ge.f32.partialorder %v446_v30, 0.0  ;;  %v482_v31 = vmul.f32 0.01, %v446_v30 }
 0x192   : > { %v484_v32 = vsel %vm472_vm15, %v420_v28, %v478_v29 }
 0x193   : > { %490 = vst [vmem:[%s1007_s20] sm:$0xff] %v484_v32  ;;  %v488_v33 = vsel %vm476_vm0, %v446_v30, %v482_v31 }
 0x194   : > { %495 = vst [vmem:[%s1007_s20 + $0x20] sm:$0xff] %v488_v33  ;;  %v469_v34 = vpop.f32.mrf.mxu2 }
 0x195   : > { %vm477_vm1 = vcmp.ge.f32.partialorder %v469_v34, 0.0  ;;  %v483_v35 = vmul.f32 0.01, %v469_v34 }
 0x196   : > { %v423_v36 = vpop.f32.mrf.mxu3 }
 0x197   : > { %v489_v37 = vsel %vm477_vm1, %v469_v34, %v483_v35  ;;  %vm475_vm2 = vcmp.ge.f32.partialorder %v423_v36, 0.0  ;;  %v481_v38 = vmul.f32 0.01, %v423_v36 }
 0x198   : > { %496 = vst.msk [vmem:[%s1007_s20 + $0x28] sm:$0xff] %vm492_vm14, %v489_v37 }
 0x199   : > { %v487_v39 = vsel %vm475_vm2, %v423_v36, %v481_v38 }
 0x19a   : > { %494 = vst [vmem:[%s1007_s20 + $0x18] sm:$0xff] %v487_v39 }
 0x19b   : > { %781 = shalt.err (!%p778_p9)
}
 0x19c   : > { %s837_s29 = smov 384   ;;  %s838_s14 = smov 24  }
 0x19d   : > { %631 = dma.vmem_to_hbm [thread:$0]  (%p914_p0), %s511_s5, 768, %s513_s16, %s498_s3, %s837_s29, %s837_s29, %s838_s14  }
 0x19e PF: > { %s527_s15 = sand.u32 1, %s812_s9   ;;  %p1059_p10 = scmp.ge.s32.totalorder %s824_s12, 2 }
 0x19f   : > { %s528_s18 = scalar_lea.sflag [#allocation5], %s527_s15 }
 0x1a0   : > { %p642_p11 = pnand %p1059_p10, %p920_p6 }
 0x1a2   : > { %p643_p12 = pneg %p642_p11 }
 0x1a4   : > { %807 = dma.done.wait (%p643_p12), %s528_s18, 768  }
 0x1a5   : > { %809 = vsyncadd (%p643_p12), %s528_s18, 4294966528  ;;  %p16_p2 = scmp.ge.s32.totalorder %s894_s23, 4   ;;  %s1060_s9 = smov %s816_s10 }
 0x1a6   : > { %s1061_s10 = smov %s820_s11  ;;  %s1062_s11 = smov %s906_s26 }
 0x1a7   : > { %s1063_s12 = smov %s894_s23  ;;  %18 = sbr.rel (!%p16_p2) target bundleno = 6 (0x6), region = 90 }
 0x1ac   :  { %534 = vsyncpa [#allocation4], 1 }
 0x1ad   :  { %536 = vsyncpa [#allocation4 + $0x1], 1 }
 0x1ae   :  { %537 = vsyncpa [#allocation7], 1 }
 0x1af   :  { %538 = vsyncpa [#allocation5], 1 }
 0x1b0   :  { %540 = vsyncpa [#allocation5 + $0x1], 1 }

</bundles_post_ra>
